<compile_context>
chip_gen: v6e
topology: v6e:2x2x1
jax: 0.10.0
libtpu: 0.0.40
codegen_flags: <defaults>
</compile_context>

<pallas_src>
import jax
import jax.numpy as jnp
from jax.experimental import pallas as pl
from jax.experimental.pallas import tpu as pltpu


def _lora_qkv_kernel(x_ref, wqkv_ref, bias_ref, a_ref, b_ref, out_ref):
    # x_ref:    (tm, C)          activation row tile (pipelined, native dtype)
    # wqkv_ref: (C, 3C)          frozen qkv weight, columns laid out [q | k | v]
    # bias_ref: (1, 3C) f32      qkv bias
    # a_ref:    (C, 2r)          fused LoRA down-projection  [A_q^T | A_v^T]
    # b_ref:    (2r, 3C)         fused LoRA up-projection (block-placed on q / v)
    # out_ref:  (tm, 3C)
    x = x_ref[...].astype(wqkv_ref.dtype)   # cast in-kernel: no extra HBM copy

    # Frozen qkv projection (MXU, f32 accumulation) + bias.
    acc = jnp.dot(x, wqkv_ref[...], preferred_element_type=jnp.float32)
    acc = acc + bias_ref[...]

    # Fused LoRA: one rank-2r down-projection, then a block up-projection whose
    # nonzero blocks add straight onto the q / v column segments (k columns hit
    # only zeros).
    mid = jnp.dot(x, a_ref[...], preferred_element_type=jnp.float32)
    acc = acc + jnp.dot(mid.astype(b_ref.dtype), b_ref[...],
                        preferred_element_type=jnp.float32)

    # Single full-width store.
    out_ref[...] = acc.astype(out_ref.dtype)


def prepare_lora_qkv_params(w_qkv, b_qkv, w_a_q, w_b_q, w_a_v, w_b_v,
                            *, compute_dtype=None):
    """One-time packing of the frozen + LoRA weights (hoisted out of forward).

    Weights are given in PyTorch nn.Linear layout (out_features, in_features).
    """
    C = w_qkv.shape[1]
    r = w_a_q.shape[0]
    dt = compute_dtype if compute_dtype is not None else jnp.asarray(w_qkv).dtype

    # W_qkv^T: (C, 3C), output columns already ordered [q | k | v].
    wqkv_t = jnp.asarray(w_qkv).T.astype(dt)

    # Bias kept in f32 (added after the f32-accumulated matmul).
    bias = jnp.asarray(b_qkv).astype(jnp.float32).reshape(1, 3 * C)

    # Fused LoRA down-projection: [A_q^T | A_v^T] -> (C, 2r).
    a_cat = jnp.concatenate(
        [jnp.asarray(w_a_q).T, jnp.asarray(w_a_v).T], axis=1).astype(dt)

    # Fused LoRA up-projection, block-placed onto the q / v column segments.
    b_blk = jnp.zeros((2 * r, 3 * C), dt)
    b_blk = b_blk.at[:r, :C].set(jnp.asarray(w_b_q).T.astype(dt))
    b_blk = b_blk.at[r:, 2 * C:].set(jnp.asarray(w_b_v).T.astype(dt))

    return {"wqkv_t": wqkv_t, "bias": bias, "a_cat": a_cat, "b_blk": b_blk,
            "C": C}


def lora_qkv(x, params, *, tm=256):
    """x: (B, H, W, C)  ->  (B, H, W, 3*C).  `tm` = row tile (sweepable)."""
    B, H, W, C_in = x.shape
    C = params["C"]
    assert C_in == C, f"channel mismatch: {C_in} vs {C}"
    wqkv_t, bias = params["wqkv_t"], params["bias"]
    a_cat, b_blk = params["a_cat"], params["b_blk"]
    n_out = wqkv_t.shape[1]                        # 3*C

    M = B * H * W
    # Row tile: multiple of 8 sublanes, no larger than the sublane-rounded rows.
    tm = max(8, min((tm // 8) * 8, pl.cdiv(M, 8) * 8))
    n_blocks = pl.cdiv(M, tm)                      # ragged last block is masked

    x2 = x.reshape(M, C)                           # free reshape, native dtype

    vmem = pl.BlockSpec(memory_space=pltpu.MemorySpace.VMEM)
    out2 = pl.pallas_call(
        _lora_qkv_kernel,
        out_shape=jax.ShapeDtypeStruct((M, n_out), x.dtype),
        grid_spec=pltpu.PrefetchScalarGridSpec(
            num_scalar_prefetch=0,
            grid=(n_blocks,),
            in_specs=[
                # Only the activations are pipelined / double-buffered.
                pl.BlockSpec((tm, C), lambda i: (i, 0)),
                # Frozen weights: whole-array VMEM residents (single copy).
                vmem,                               # W_qkv^T
                vmem,                               # bias
                vmem,                               # A fused
                vmem,                               # B fused
            ],
            out_specs=pl.BlockSpec((tm, n_out), lambda i: (i, 0)),
        ),
        compiler_params=pltpu.CompilerParams(
            dimension_semantics=("parallel",)),
    )(x2, wqkv_t, bias, a_cat, b_blk)

    return out2.reshape(B, H, W, n_out)


def _reference(x, w_qkv, b_qkv, w_a_q, w_b_q, w_a_v, w_b_v):
    C = x.shape[-1]
    qkv = jnp.einsum("bhwc,oc->bhwo", x, w_qkv) + b_qkv
    new_q = jnp.einsum("bhwr,or->bhwo",
                       jnp.einsum("bhwc,rc->bhwr", x, w_a_q), w_b_q)
    new_v = jnp.einsum("bhwr,or->bhwo",
                       jnp.einsum("bhwc,rc->bhwr", x, w_a_v), w_b_v)
    qkv = qkv.at[..., :C].add(new_q)
    qkv = qkv.at[..., -C:].add(new_v)
    return qkv


if __name__ == "__main__":
    key = jax.random.PRNGKey(0)
    B, H, W, C = 2, 8, 8, 32     # small SAM2-like windowed input, dim = 32
    r = 4                        # LoRA rank

    ks = jax.random.split(key, 8)
    x = jax.random.normal(ks[0], (B, H, W, C), dtype=jnp.float32)

    # Deterministic synthetic parameters (PyTorch Linear layout: (out, in)).
    w_qkv = jax.random.normal(ks[1], (3 * C, C), dtype=jnp.float32) * 0.05
    b_qkv = jax.random.normal(ks[2], (3 * C,), dtype=jnp.float32) * 0.05
    w_a_q = jax.random.normal(ks[3], (r, C), dtype=jnp.float32) * 0.05   # linear_a_q
    w_b_q = jax.random.normal(ks[4], (C, r), dtype=jnp.float32) * 0.05   # linear_b_q
    w_a_v = jax.random.normal(ks[5], (r, C), dtype=jnp.float32) * 0.05   # linear_a_v
    w_b_v = jax.random.normal(ks[6], (C, r), dtype=jnp.float32) * 0.05   # linear_b_v

    ref = _reference(x, w_qkv, b_qkv, w_a_q, w_b_q, w_a_v, w_b_v)

    # f32 compute path (tight tolerance). tm=48 -> grid of 3 with a ragged
    # final block (M = 128), exercising the masked-last-block path.
    params_f32 = prepare_lora_qkv_params(
        w_qkv, b_qkv, w_a_q, w_b_q, w_a_v, w_b_v, compute_dtype=jnp.float32)
    out = jax.block_until_ready(lora_qkv(x, params_f32, tm=48))
    assert out.shape == (B, H, W, 3 * C)
    assert jnp.allclose(out, ref, atol=1e-4, rtol=1e-4), "f32 mismatch vs reference"

    # bf16 operands / f32 accumulation (recommended MXU path on v6e/v7x),
    # evenly dividing tile (tm=64 -> 2 grid steps).
    params_bf16 = prepare_lora_qkv_params(
        w_qkv, b_qkv, w_a_q, w_b_q, w_a_v, w_b_v, compute_dtype=jnp.bfloat16)
    out_bf16 = jax.block_until_ready(lora_qkv(x, params_bf16, tm=64))
    assert jnp.allclose(out_bf16, ref, atol=3e-2, rtol=3e-2), "bf16 mismatch vs reference"

    print("KERNEL_OK")
</pallas_src>

<mosaic_0001>
module attributes {stable_mosaic.version = 11 : i64} {
  func.func @_lora_qkv_kernel(%arg0: i32, %arg1: memref<48x32xf32, #tpu.memory_space<vmem>>, %arg2: memref<32x96xf32, #tpu.memory_space<vmem>>, %arg3: memref<1x96xf32, #tpu.memory_space<vmem>>, %arg4: memref<32x8xf32, #tpu.memory_space<vmem>>, %arg5: memref<8x96xf32, #tpu.memory_space<vmem>>, %arg6: memref<48x96xf32, #tpu.memory_space<vmem>>) attributes {dimension_semantics = [#tpu.dimension_semantics<parallel>], iteration_bounds = array<i64: 3>, scalar_prefetch = 0 : i64, scratch_operands = 0 : i64, tpu.core_type = #tpu.core_type<tc>, window_params = [{transform_indices = @transform_0, window_bounds = array<i64: 48, 32>}, {pipeline_mode = #tpu.pipeline_mode<synchronous>, transform_indices = @transform_1, window_bounds = array<i64: 32, 96>}, {pipeline_mode = #tpu.pipeline_mode<synchronous>, transform_indices = @transform_2, window_bounds = array<i64: 1, 96>}, {pipeline_mode = #tpu.pipeline_mode<synchronous>, transform_indices = @transform_3, window_bounds = array<i64: 32, 8>}, {pipeline_mode = #tpu.pipeline_mode<synchronous>, transform_indices = @transform_4, window_bounds = array<i64: 8, 96>}, {transform_indices = @transform_5, window_bounds = array<i64: 48, 96>}]} {
    %c0 = arith.constant 0 : index
    %c0_0 = arith.constant 0 : index
    %0 = vector.load %arg1[%c0, %c0_0] : memref<48x32xf32, #tpu.memory_space<vmem>>, vector<48x32xf32>
    %c0_1 = arith.constant 0 : index
    %c0_2 = arith.constant 0 : index
    %1 = vector.load %arg2[%c0_1, %c0_2] : memref<32x96xf32, #tpu.memory_space<vmem>>, vector<32x96xf32>
    %cst = arith.constant dense<0.000000e+00> : vector<48x96xf32>
    %2 = tpu.matmul %0, %1, %cst {dimension_numbers = #tpu.dot_dimension_numbers<[1], [0], [0], [1], [0, 0, 1, 1], [], []>} : vector<48x32xf32>, vector<32x96xf32>, vector<48x96xf32> -> vector<48x96xf32>
    %c0_3 = arith.constant 0 : index
    %c0_4 = arith.constant 0 : index
    %3 = vector.load %arg3[%c0_3, %c0_4] : memref<1x96xf32, #tpu.memory_space<vmem>>, vector<1x96xf32>
    %4 = vector.broadcast %3 : vector<1x96xf32> to vector<48x96xf32>
    %5 = arith.addf %2, %4 : vector<48x96xf32>
    %c0_5 = arith.constant 0 : index
    %c0_6 = arith.constant 0 : index
    %6 = vector.load %arg4[%c0_5, %c0_6] : memref<32x8xf32, #tpu.memory_space<vmem>>, vector<32x8xf32>
    %cst_7 = arith.constant dense<0.000000e+00> : vector<48x8xf32>
    %7 = tpu.matmul %0, %6, %cst_7 {dimension_numbers = #tpu.dot_dimension_numbers<[1], [0], [0], [1], [0, 0, 1, 1], [], []>} : vector<48x32xf32>, vector<32x8xf32>, vector<48x8xf32> -> vector<48x8xf32>
    %c0_8 = arith.constant 0 : index
    %c0_9 = arith.constant 0 : index
    %8 = vector.load %arg5[%c0_8, %c0_9] : memref<8x96xf32, #tpu.memory_space<vmem>>, vector<8x96xf32>
    %cst_10 = arith.constant dense<0.000000e+00> : vector<48x96xf32>
    %9 = tpu.matmul %7, %8, %cst_10 {dimension_numbers = #tpu.dot_dimension_numbers<[1], [0], [0], [1], [0, 0, 1, 1], [], []>} : vector<48x8xf32>, vector<8x96xf32>, vector<48x96xf32> -> vector<48x96xf32>
    %10 = arith.addf %5, %9 : vector<48x96xf32>
    %c0_11 = arith.constant 0 : index
    %c0_12 = arith.constant 0 : index
    %11 = vector.load %arg6[%c0_11, %c0_12] : memref<48x96xf32, #tpu.memory_space<vmem>>, vector<48x96xf32>
    tpu.vector_store %arg6[%c0_11, %c0_12], %10 {strides = array<i32>} : memref<48x96xf32, #tpu.memory_space<vmem>>, vector<48x96xf32>,
    return
  }
  func.func @transform_0(%arg0: i32) -> (i32, i32) {
    %c0_i32 = arith.constant 0 : i32
    %c0_i32_0 = arith.constant 0 : i32
    return %arg0, %c0_i32 : i32, i32
  }
  func.func @transform_1(%arg0: i32) -> (i32, i32) {
    %c0_i32 = arith.constant 0 : i32
    %c0_i32_0 = arith.constant 0 : i32
    %c0_i32_1 = arith.constant 0 : i32
    return %c0_i32, %c0_i32_0 : i32, i32
  }
  func.func @transform_2(%arg0: i32) -> (i32, i32) {
    %c0_i32 = arith.constant 0 : i32
    %c0_i32_0 = arith.constant 0 : i32
    %c0_i32_1 = arith.constant 0 : i32
    return %c0_i32, %c0_i32_0 : i32, i32
  }
  func.func @transform_3(%arg0: i32) -> (i32, i32) {
    %c0_i32 = arith.constant 0 : i32
    %c0_i32_0 = arith.constant 0 : i32
    %c0_i32_1 = arith.constant 0 : i32
    return %c0_i32, %c0_i32_0 : i32, i32
  }
  func.func @transform_4(%arg0: i32) -> (i32, i32) {
    %c0_i32 = arith.constant 0 : i32
    %c0_i32_0 = arith.constant 0 : i32
    %c0_i32_1 = arith.constant 0 : i32
    return %c0_i32, %c0_i32_0 : i32, i32
  }
  func.func @transform_5(%arg0: i32) -> (i32, i32) {
    %c0_i32 = arith.constant 0 : i32
    %c0_i32_0 = arith.constant 0 : i32
    return %arg0, %c0_i32 : i32, i32
  }
}

</mosaic_0001>

<bundles_post_ra>
// kernel: tpu_custom_call.1
= control target key start
LH: loop header
LB: loop body
LE: loop exit
PB: predicated region body
PF: predicated region fallthrough
CT: control target
= control target key end

     0   :  { %s1171_s18 = smov 0   ;;  %s1173_s19 = smov 0   ;;  %s1321_s0 = inlined_call_operand.vmem [shape: f32[128,32], index: 0, kind: input, shape index: {}]   ;;  %s1322_s1 = inlined_call_operand.vmem [shape: f32[32,96], index: 1, kind: input, shape index: {}]   ;;  %s1323_s2 = inlined_call_operand.vmem [shape: f32[1,96], index: 2, kind: input, shape index: {}]   ;;  %s1324_s3 = inlined_call_operand.vmem [shape: f32[32,8], index: 3, kind: input, shape index: {}]   ;;  %s1325_s4 = inlined_call_operand.vmem [shape: f32[8,96], index: 4, kind: input, shape index: {}]   ;;  %s1326_s5 = inlined_call_operand.vmem [shape: f32[128,96], index: 5, kind: output, shape index: {}]  }
   0x1   :  { %s1175_s20 = smov 0  }
   0x2 LB: > { %s1184_s21 = sadd.s32 4294967295, %s1107_s20   ;;  %s1186_s22 = sadd.s32 1, %s1107_s20   ;;  %s1107_s20 = sphi %s1175_s20, %s1333_s20   ;;  %s1103_s19 = sphi %s1173_s19, %s1332_s19   ;;  %s1099_s18 = sphi %s1171_s18, %s1331_s18  }
   0x3   : > { %s129_s23 = ssub.s32 %s1107_s20, %s1186_s22  ;;  %s132_s24 = sadd.s32 1, %s1103_s19 }
   0x4   : > { %p130_p0 = scmp.eq.s32.totalorder %s129_s23, 0  ;;  %p142_p1 = scmp.ne.s32.totalorder %s1103_s19, %s1099_s18 }
   0x5   : > { %p143_p2 = scmp.eq.s32.totalorder %s1184_s21, 2  ;;  %p845_p3 = scmp.ge.s32.totalorder %s1107_s20, 1 }
   0x6   : > { %s1194_s25 = scalar_select %p130_p0, %s1103_s19, %s132_s24  }
   0x7   : > { %p1196_p4 = por %p143_p2, %p142_p1  ;;  %p196_p5 = scmp.lt.s32.totalorder %s1107_s20, 4 }
   0x9   : > { %p197_p6 = pnand %p845_p3, %p196_p5 }
   0xa   : > { %s1207_s6 = smul.u32 (!%p197_p6), 6, %s1184_s21  ;;  %s224_s8 = sand.u32 (!%p197_p6), 1, %s1099_s18  }
   0xb   : > { %200 = sbr.rel (%p197_p6) target bundleno = 489 (0x1e9), region = 40 }
   0xc   : > { %p232_p7 = scmp.lt.s32.totalorder (!%p197_p6), %s1207_s6, 15  ;;  %s959_s9 = smul.u32 (!%p197_p6), 48, %s224_s8 }
  0x10   : > { %v255_v0 = vld [vmem:[%s1322_s1 + $0x18] sm:$0xff]  ;;  %v254_v1 = vld [vmem:[%s1322_s1 + $0x10] sm:$0xff]  ;;  %v253_v2 = vld [vmem:[%s1322_s1 + $0x8] sm:$0xff]  ;;  %s233_s11 = scalar_select %p232_p7, %s1207_s6, 15  ;;  %vm263_vm0 = vcmask 261120   ;;  %vm477_vm1 = vcmask 64512  }
  0x11   : > { %951 = vmatprep.subr.mxu1 %v255_v0  ;;  %906 = vmatprep.subr.mxu0 %v255_v0  ;;  %v252_v3 = vld [vmem:[%s1322_s1] sm:$0xff]  ;;  %v380_v4 = vld [vmem:[%s1324_s3 + $0x18] sm:$0xff]  ;;  %v379_v8 = vld [vmem:[%s1324_s3 + $0x10] sm:$0xff]  ;;  %vm597_vm2 = vcmask 785408   ;;  %s612_s18 = ssub.s32 (%p1196_p4), 16, %s1207_s6  ;;  %s878_s13 = smul.u32 (%p1196_p4), 48, %s1184_s21 }
  0x12   : > { %955 = vmatpush3.msra.mxu1 %v255_v0  ;;  %907 = vmatpush3.msra.mxu0 %v255_v0  ;;  %s846_s12 = sshll.u32 %s233_s11, 3  ;;  %v378_v10 = vld [vmem:[%s1324_s3 + $0x8] sm:$0xff]  ;;  %v377_v13 = vld [vmem:[%s1324_s3] sm:$0xff]  ;;  %p613_p8 = scmp.lt.s32.totalorder (%p1196_p4), %s612_s18, 6 }
  0x13   : > { %952 = vmatprep.subr.mxu1 %v254_v1  ;;  %908 = vmatprep.subr.mxu0 %v254_v1  ;;  %s235_s17 = scalar_lea.vmem %s1321_s0, %s846_s12  ;;  %v476_v14 = vld [vmem:[%s1325_s4] sm:$0xff]  ;;  %s1251_s12 = scalar_lea.vmem [#allocation2], %s959_s9  }
  0x14   : > { %956 = vmatpush3.msra.mxu1 %v254_v1  ;;  %909 = vmatpush3.msra.mxu0 %v254_v1  ;;  %v248_v5 = vld [vmem:[%s235_s17 + $0x10] sm:$0xff]  ;;  %v249_v6 = vld [vmem:[%s235_s17 + $0x18] sm:$0xff]  ;;  %v250_v7 = vld [vmem:[%s235_s17 + $0x20] sm:$0xff]  ;;  %s1272_s16 = scalar_lea.vmem (%p1196_p4), %s1326_s5, %s878_s13  }
  0x15   : > { %953 = vmatprep.subr.mxu1 %v253_v2  ;;  %910 = vmatprep.subr.mxu0 %v253_v2  ;;  %v246_v9 = vld [vmem:[%s235_s17] sm:$0xff]  ;;  %v251_v11 = vld [vmem:[%s235_s17 + $0x28] sm:$0xff] }
  0x16   : > { %957 = vmatpush3.msra.mxu1 %v253_v2  ;;  %911 = vmatpush3.msra.mxu0 %v253_v2  ;;  %v247_v12 = vld [vmem:[%s235_s17 + $0x8] sm:$0xff]  ;;  %v847_v26 = vld [vmem:[%s1323_s2] ss:$0 sm:$0xff] }
  0x17   : > { %954 = vmatprep.subr.mxu1 %v252_v3  ;;  %912 = vmatprep.subr.mxu0 %v252_v3 }
  0x18   : > { %958 = vmatpush3.msra.mxu1 %v252_v3  ;;  %913 = vmatpush3.msra.mxu0 %v252_v3 }
  0x19   : > { %917 = vmatprep.mubr.msk.f32.mxu1 %vm263_vm0, %v248_v5  ;;  %923 = vmatprep.subr.mxu1 %v380_v4 }
  0x1a   : > { %918 = vmatmul.mubr.msk.f32.vlgmr.msra.gmra.mxu1 %vm263_vm0, %v249_v6  ;;  %914 = vmatprep.mubr.msk.f32.mxu0 %vm263_vm0, %v246_v9 }
  0x1b   : > { %924 = vmatpush3.msra.mxu1 %v380_v4  ;;  %920 = vmatprep.mubr.msk.f32.mxu1 %vm263_vm0, %v250_v7 }
  0x1c   : > { %925 = vmatprep.subr.mxu1 %v379_v8  ;;  %915 = vmatmul.mubr.msk.f32.vlgmr.msra.gmra.mxu0 %vm263_vm0, %v247_v12 }
  0x1d   : > { %926 = vmatpush3.msra.mxu1 %v379_v8  ;;  %940 = vmatprep.subr.mxu0 %v476_v14 }
  0x1e   : > { %927 = vmatprep.subr.mxu1 %v378_v10  ;;  %921 = vmatmul.mubr.msk.f32.gmra.mxu1 %vm263_vm0, %v251_v11 }
  0x1f   : > { %928 = vmatpush3.msra.mxu1 %v378_v10  ;;  %931 = vmatprep.mubr.msk.f32.mxu1 %vm263_vm0, %v246_v9 }
  0x20   : > { %929 = vmatprep.subr.mxu1 %v377_v13  ;;  %941 = vmatpush3.msra.mxu0 %v476_v14 }
  0x21   : > { %930 = vmatpush3.msra.mxu1 %v377_v13 }
  0x22   : > { %932 = vmatmul.mubr.msk.f32.vlgmr.msra.gmra.mxu1 %vm263_vm0, %v247_v12 }
  0x23   : > { %934 = vmatprep.mubr.msk.f32.mxu1 %vm263_vm0, %v248_v5 }
  0x26   : > { %935 = vmatmul.mubr.msk.f32.gmra.mxu1 %vm263_vm0, %v249_v6 }
  0x27   : > { %937 = vmatprep.mubr.msk.f32.mxu1 %vm263_vm0, %v250_v7 }
  0x2a   : > { %938 = vmatmul.mubr.msk.f32.gmra.mxu1 %vm263_vm0, %v251_v11 }
  0xda   : > { %v919_v15 = vpop.f32.mrf.mxu1 }
  0xdb   : > { %v364_v33 = vadd.f32 %v919_v15, %v847_v26 }
  0xdc   : > { %v358_v16 = vpop.f32.mrf.mxu1  ;;  %v916_v25 = vpop.f32.mrf.mxu0 }
  0xdd   : > { %v354_v28 = vadd.f32 %v916_v25, %v847_v26  ;;  %v359_v36 = vadd.f32 %v847_v26, %v358_v16 }
  0xde   : > { %v922_v17 = vpop.f32.mrf.mxu1  ;;  %v348_v27 = vpop.f32.mrf.mxu0 }
  0xdf   : > { %v349_v30 = vadd.f32 %v847_v26, %v348_v27  ;;  %v374_v39 = vadd.f32 %v922_v17, %v847_v26 }
  0xe0   : > { %v368_v18 = vpop.f32.mrf.mxu1 }
  0xe1   : > { %v369_v42 = vadd.f32 %v847_v26, %v368_v18 }
  0xe2   : > { %v933_v19 = vpop.f32.mrf.mxu1 }
  0xe4   : > { %v447_v20 = vpop.f32.mrf.mxu1 }
  0xe5   : > { %942 = vmatprep.mubr.msk.f32.mxu0 %vm477_vm1, %v447_v20 }
  0xe6   : > { %v936_v21 = vpop.f32.mrf.mxu1  ;;  %943 = vmatmul.mubr.msk.f32.vlgmr.msra.gmra.mxu0 %vm477_vm1, %v933_v19 }
  0xe8   : > { %v457_v22 = vpop.f32.mrf.mxu1 }
  0xe9   : > { %945 = vmatprep.mubr.msk.f32.mxu0 %vm477_vm1, %v457_v22 }
  0xea   : > { %v939_v23 = vpop.f32.mrf.mxu1  ;;  %946 = vmatmul.mubr.msk.f32.gmra.mxu0 %vm477_vm1, %v936_v21 }
  0xec   : > { %v467_v24 = vpop.f32.mrf.mxu1 }
  0xed   : > { %948 = vmatprep.mubr.msk.f32.mxu0 %vm477_vm1, %v467_v24 }
  0xee   : > { %949 = vmatmul.mubr.msk.f32.gmra.mxu0 %vm477_vm1, %v939_v23 }
 0x1a6   : > { %v944_v29 = vpop.f32.mrf.mxu0 }
 0x1a7   : > { %v592_v31 = vadd.f32 %v944_v29, %v354_v28 }
 0x1a8   : > { %v562_v32 = vpop.f32.mrf.mxu0 }
 0x1a9   : > { %599 = vst.msk [vmem:[%s1251_s12 + $0x8] sm:$0xff] %vm597_vm2, %v592_v31  ;;  %v591_v34 = vadd.f32 %v562_v32, %v349_v30 }
 0x1aa   : > { %v947_v35 = vpop.f32.mrf.mxu0 }
 0x1ab   : > { %598 = vst.msk [vmem:[%s1251_s12] sm:$0xff] %vm597_vm2, %v591_v34  ;;  %v594_v37 = vadd.f32 %v947_v35, %v364_v33 }
 0x1ac   : > { %v572_v38 = vpop.f32.mrf.mxu0 }
 0x1ad   : > { %601 = vst.msk [vmem:[%s1251_s12 + $0x18] sm:$0xff] %vm597_vm2, %v594_v37  ;;  %v593_v40 = vadd.f32 %v572_v38, %v359_v36 }
 0x1ae   : > { %v950_v41 = vpop.f32.mrf.mxu0 }
 0x1af   : > { %600 = vst.msk [vmem:[%s1251_s12 + $0x10] sm:$0xff] %vm597_vm2, %v593_v40  ;;  %v596_v43 = vadd.f32 %v950_v41, %v374_v39  ;;  %610 = sbr.rel (!%p1196_p4) target bundleno = 489 (0x1e9), region = 44 }
 0x1b0   : > { %v582_v44 = vpop.f32.mrf.mxu0 }
 0x1b1   : > { %603 = vst.msk [vmem:[%s1251_s12 + $0x28] sm:$0xff] %vm597_vm2, %v596_v43  ;;  %v595_v45 = vadd.f32 %v582_v44, %v369_v42 }
 0x1b3   : > { %602 = vst.msk [vmem:[%s1251_s12 + $0x20] sm:$0xff] %vm597_vm2, %v595_v45 }
 0x1b4   : > { %s1335_s18 = smov (!%p613_p8, %s612_s18), 6 }
 0x1b5   : > { %s866_s17 = sshll.u32 %s1335_s18, 7 }
 0x1b6   : > { %p869_p9 = scmp.eq.s32.totalorder %s866_s17, 0 }
 0x1b7   : > { %1049 = sdivrem.u32 (!%p869_p9), %s1335_s18, 6 }
 0x1b8   : > { %621 = sbr.rel (%p869_p9) target bundleno = 489 (0x1e9), region = 48 }
 0x1c0   : > { %s1278_s26 = spop.drf %1049 }
 0x1c1   : > { %p870_p10 = scmp.le.s32.totalorder %s1278_s26, 0 }
 0x1c2   : > { %s1328_s21 = smov (!%p870_p10), %s1272_s16  ;;  %s1329_s6 = smov (!%p870_p10), %s1251_s12 }
 0x1c3   : > { %798 = sbr.rel (%p870_p10) target bundleno = 464 (0x1d0), region = 124  ;;  %s1287_s20 = smov (!%p870_p10), 0  }
 0x1c4   : > { %s1289_s23 = smov (!%p870_p10), 0  }
 0x1c8 LB: >> { %v696_v46 = vld [vmem:[%s1115_s6] sm:$0xff]  ;;  %v698_v47 = vld [vmem:[%s1115_s6 + $0x8] sm:$0xff]  ;;  %v700_v48 = vld [vmem:[%s1115_s6 + $0x10] sm:$0xff]  ;;  %s708_s24 = sadd.s32 1, %s1119_s20  ;;  %s690_s23 = sadd.s32 1, %s1123_s23   ;;  %s1123_s23 = sphi %s1289_s23, %s690_s23   ;;  %s1119_s20 = sphi %s1287_s20, %s1330_s20   ;;  %s1115_s6 = sphi %s1329_s6, %s713_s6   ;;  %s1111_s21 = sphi %s1328_s21, %s714_s21  }
 0x1c9   : >> { %697 = vst [vmem:[%s1111_s21] sm:$0xff] %v696_v46  ;;  %699 = vst [vmem:[%s1111_s21 + $0x8] sm:$0xff] %v698_v47  ;;  %v702_v49 = vld [vmem:[%s1115_s6 + $0x18] sm:$0xff]  ;;  %v704_v50 = vld [vmem:[%s1115_s6 + $0x20] sm:$0xff]  ;;  %p709_p11 = scmp.ge.s32.totalorder %s708_s24, %s1278_s26  ;;  %p689_p12 = scmp.ge.s32.totalorder %s690_s23, %s1278_s26 }
 0x1ca   : >> { %701 = vst [vmem:[%s1111_s21 + $0x10] sm:$0xff] %v700_v48  ;;  %v706_v51 = vld [vmem:[%s1115_s6 + $0x28] sm:$0xff]  ;;  %703 = vst [vmem:[%s1111_s21 + $0x18] sm:$0xff] %v702_v49 }
 0x1cb   : >> { %705 = vst [vmem:[%s1111_s21 + $0x20] sm:$0xff] %v704_v50  ;;  %707 = vst [vmem:[%s1111_s21 + $0x28] sm:$0xff] %v706_v51  ;;  %s1337_s24 = smov (%p709_p11, %s708_s24), 0  ;;  %692 = sbr.rel (!%p689_p12) target bundleno = 456 (0x1c8), region = 130 }
 0x1cc   : >> { %s711_s27 = smul.u32 48, %s1337_s24  ;;  %s1330_s20 = smov %s1337_s24 }
 0x1ce   : >> { %s713_s6 = scalar_lea.vmem %s1251_s12, %s711_s27 [#allocation2]   ;;  %s714_s21 = scalar_lea.vmem %s1272_s16, %s711_s27  }
 0x1d0 PF: > { %1051 = sdivrem.u32 %s1335_s18, 6 }
 0x1d1   : > { %s871_s28 = smul.u32 48, %s1278_s26 }
 0x1d3   : > { %s719_s29 = scalar_lea.vmem %s1251_s12, %s871_s28 [#allocation2]   ;;  %s721_s30 = scalar_lea.vmem %s1272_s16, %s871_s28  }
 0x1d9   : > { %s1052_s7 = spop.drf %1051 }
 0x1da   : > { %p873_p13 = scmp.le.s32.totalorder %s1052_s7, 0 }
 0x1db   : > { %s1125_s8 = smov (!%p873_p13), %s721_s30   ;;  %s1129_s9 = smov (!%p873_p13), %s719_s29  }
 0x1dc   : > { %812 = sbr.rel (%p873_p13) target bundleno = 489 (0x1e9), region = 135  ;;  %s1133_s10 = smov (!%p873_p13), 0  }
 0x1dd   : > { %s1137_s11 = smov (!%p873_p13), 0  }
 0x1e1 LB: >> { %v731_v52 = vld [vmem:[%s1131_s9] sm:$0xff]  ;;  %s733_s13 = sadd.s32 1, %s1135_s10  ;;  %s725_s11 = sadd.s32 1, %s1139_s11   ;;  %s1139_s11 = sphi %s1137_s11, %s725_s11   ;;  %s1135_s10 = sphi %s1133_s10, %s1134_s10   ;;  %s1131_s9 = sphi %s1129_s9, %s738_s9   ;;  %s1127_s8 = sphi %s1125_s8, %s739_s8  }
 0x1e2   : >> { %732 = vst [vmem:[%s1127_s8] sm:$0xff] %v731_v52  ;;  %p734_p0 = scmp.ge.s32.totalorder %s733_s13, %s1052_s7  ;;  %p724_p1 = scmp.ge.s32.totalorder %s725_s11, %s1052_s7 }
 0x1e4   : >> { %s1339_s13 = smov (%p734_p0, %s733_s13), 0  ;;  %727 = sbr.rel (!%p724_p1) target bundleno = 481 (0x1e1), region = 141 }
 0x1e5   : >> { %s874_s12 = sshll.u32 %s1339_s13, 3  ;;  %s1134_s10 = smov %s1339_s13  }
 0x1e6   : >> { %s738_s9 = scalar_lea.vmem %s719_s29, %s874_s12 [#allocation2]   ;;  %s739_s8 = scalar_lea.vmem %s721_s30, %s874_s12  }
 0x1e9 PF: > { %p12_p2 = scmp.ge.s32.totalorder %s1186_s22, 5   ;;  %s1331_s18 = smov %s1103_s19 }
 0x1ea   : > { %s1332_s19 = smov %s1194_s25  ;;  %s1333_s20 = smov %s1186_s22 }
 0x1eb   :  { %14 = sbr.rel (!%p12_p2) target bundleno = 2 (0x2), region = 152 }

</bundles_post_ra>
